<compile_context>
chip_gen: v7x
topology: tpu7x:2x2x1
jax: 0.10.0
libtpu: 0.0.40
codegen_flags: <defaults>
</compile_context>

<pallas_src>
import jax
import jax.numpy as jnp
from jax.experimental import pallas as pl
from jax.experimental.pallas import tpu as pltpu


def _crop_copy_kernel(x_ref, o_ref):
    # x_ref block: (tile_bc, bh_in, W)   o_ref block: (tile_bc, bh_out, W-1)
    # Pure copy of the cropped sub-rectangle. Ragged tail blocks (on the BC or
    # H grid axes) read unspecified data that is never written back because
    # out-of-bounds output writes are discarded by Pallas.
    o_ref[...] = x_ref[:, : o_ref.shape[1], : o_ref.shape[2]]


def _round_up(x: int, m: int) -> int:
    return ((x + m - 1) // m) * m


def _vmem_capacity_bytes() -> int:
    """Physical VMEM per TensorCore; conservative fallback if unqueryable."""
    try:
        cap = getattr(pltpu.get_tpu_info(), "vmem_capacity_bytes", None)
        if cap:
            return int(cap)
    except Exception:
        pass
    return 64 * 1024 * 1024  # v7x per-TC VMEM (smallest current generation)


def crop(x: jax.Array) -> jax.Array:
    """Crop the last row and last column of an NCHW tensor via a Pallas kernel."""
    B, C, H, W = x.shape
    H_out, W_out = H - 1, W - 1

    # Degenerate spatial sizes: empty output, nothing for a kernel to do.
    if H_out <= 0 or W_out <= 0:
        return x[:, :, :H_out, :W_out]

    BC = B * C
    dtype = jnp.dtype(x.dtype)
    itemsize = dtype.itemsize
    # Native VMEM tile: (sublanes, 128) lanes; sublanes = 8 (4B) / 16 (2B) / 32 (1B).
    sublanes = max(8, 32 // itemsize)
    lanes = 128

    # ---- padded (VMEM-resident) footprints --------------------------------
    pad_w_in = _round_up(W, lanes)
    pad_w_out = _round_up(W_out, lanes)
    full_plane_in = _round_up(H, sublanes) * pad_w_in * itemsize
    full_plane_out = _round_up(H_out, sublanes) * pad_w_out * itemsize

    vmem_cap = _vmem_capacity_bytes()
    # Budget for the complete double-buffered (2*in + 2*out) block set:
    # 3/8 of physical VMEM -> ~48 MiB on v5e/v6e (128 MiB), ~24 MiB on v7x (64 MiB).
    budget = (vmem_cap * 3) // 8

    min_steps = 4  # keep 2-deep pipelining busy; >= 2 steps per v7x TensorCore

    per_bc_pair = 2 * (full_plane_in + full_plane_out)  # dbl-buffered, one plane
    if per_bc_pair <= budget:
        # Full (H, W) planes per block; tile the collapsed BC axis.
        tile_bc_max = max(1, budget // per_bc_pair)
        steps_bc = max(pl.cdiv(BC, tile_bc_max), min(min_steps, BC))
        tile_bc = pl.cdiv(BC, steps_bc)          # balanced tail
        steps_bc = pl.cdiv(BC, tile_bc)
        if steps_bc >= min_steps or H_out <= sublanes:
            # Full-dim last-two block dims -> (8,128) rule trivially satisfied.
            tile_h_in, tile_h_out, steps_h = H, H_out, 1
        else:
            # Not enough BC tiles to keep the pipeline (and v7x cores) busy:
            # also split H into sublane-aligned tiles.
            want_h = pl.cdiv(min_steps, steps_bc)
            tile_h = _round_up(pl.cdiv(H_out, want_h), sublanes)
            steps_h = pl.cdiv(H_out, tile_h)
            tile_h_in = tile_h_out = tile_h
    else:
        # A single padded plane exceeds the budget: tile H as well (W stays
        # full in the lane dim; tile_h is a multiple of the sublane count).
        tile_bc, steps_bc = 1, BC
        row_pair = 2 * (pad_w_in + pad_w_out) * itemsize  # dbl-buffered padded row
        tile_h = max(sublanes, (budget // max(row_pair, 1)) // sublanes * sublanes)
        tile_h = min(tile_h, _round_up(H_out, sublanes))
        steps_h = pl.cdiv(H_out, tile_h)
        tile_h = _round_up(pl.cdiv(H_out, steps_h), sublanes)  # balanced tail
        steps_h = pl.cdiv(H_out, tile_h)
        tile_h_in = tile_h_out = tile_h

    # Footprint-derived VMEM limit: actual double-buffered blocks + 25% + 1 MiB.
    blk_in_bytes = tile_bc * _round_up(tile_h_in, sublanes) * pad_w_in * itemsize
    blk_out_bytes = tile_bc * _round_up(tile_h_out, sublanes) * pad_w_out * itemsize
    footprint = 2 * (blk_in_bytes + blk_out_bytes)
    vmem_limit = int(footprint * 1.25) + (1 << 20)
    vmem_limit = max(16 * 1024 * 1024, min(vmem_limit, int(vmem_cap * 0.9)))

    # Collapse (B, C) -> BC: free reshape of contiguous leading dims.
    x3 = x.reshape(BC, H, W)

    out3 = pl.pallas_call(
        _crop_copy_kernel,
        out_shape=jax.ShapeDtypeStruct((BC, H_out, W_out), x.dtype),
        grid_spec=pltpu.PrefetchScalarGridSpec(
            num_scalar_prefetch=0,
            grid=(steps_bc, steps_h),
            in_specs=[
                pl.BlockSpec((tile_bc, tile_h_in, W), lambda i, j: (i, j, 0)),
            ],
            out_specs=pl.BlockSpec((tile_bc, tile_h_out, W_out), lambda i, j: (i, j, 0)),
        ),
        compiler_params=pltpu.CompilerParams(
            # Both axes produce disjoint output blocks.
            dimension_semantics=("parallel", "parallel"),
            vmem_limit_bytes=vmem_limit,
        ),
        cost_estimate=pl.CostEstimate(
            flops=0,
            transcendentals=0,
            bytes_accessed=BC * (H * W + H_out * W_out) * itemsize,
        ),
    )(x3)

    return out3.reshape(B, C, H_out, W_out)


if __name__ == "__main__":
    key = jax.random.PRNGKey(0)

    # Primary case (matches the module's intended small NCHW input).
    B, C, H, W = 2, 4, 16, 16
    x = jax.random.normal(key, (B, C, H, W), dtype=jnp.float32)
    y = crop(x)
    jax.block_until_ready(y)
    y_ref = x[:, :, : H - 1, : W - 1]
    assert y.shape == (B, C, H - 1, W - 1), y.shape
    assert y.dtype == x.dtype
    assert bool(jnp.array_equal(y, y_ref))

    # Exercise the 2-D (BC, H) tiled path (small BC forces H splitting).
    x2 = jax.random.normal(jax.random.PRNGKey(0), (1, 2, 33, 16), dtype=jnp.float32)
    y2 = crop(x2)
    jax.block_until_ready(y2)
    assert bool(jnp.array_equal(y2, x2[:, :, :32, :15]))

    # Exercise a packed dtype (bf16 sublane padding accounting).
    x3 = jax.random.normal(jax.random.PRNGKey(0), (2, 4, 16, 16), dtype=jnp.bfloat16)
    y3 = crop(x3)
    jax.block_until_ready(y3)
    assert bool(jnp.array_equal(y3, x3[:, :, :15, :15]))

    print("KERNEL_OK")
</pallas_src>

<mosaic_0001>
module attributes {stable_mosaic.version = 11 : i64} {
  func.func @_crop_copy_kernel(%arg0: i32, %arg1: i32, %arg2: memref<2x16x16xf32, #tpu.memory_space<vmem>>, %arg3: memref<2x15x15xf32, #tpu.memory_space<vmem>>) attributes {dimension_semantics = [#tpu.dimension_semantics<parallel>, #tpu.dimension_semantics<parallel>], iteration_bounds = array<i64: 4, 1>, scalar_prefetch = 0 : i64, scratch_operands = 0 : i64, tpu.core_type = #tpu.core_type<tc>, window_params = [{transform_indices = @transform_0, window_bounds = array<i64: 2, 16, 16>}, {transform_indices = @transform_1, window_bounds = array<i64: 2, 15, 15>}]} {
    %c0 = arith.constant 0 : index
    %c0_0 = arith.constant 0 : index
    %c0_1 = arith.constant 0 : index
    %0 = vector.load %arg2[%c0, %c0_0, %c0_1] : memref<2x16x16xf32, #tpu.memory_space<vmem>>, vector<2x15x15xf32>
    %c0_2 = arith.constant 0 : index
    %c0_3 = arith.constant 0 : index
    %c0_4 = arith.constant 0 : index
    %1 = vector.load %arg3[%c0_2, %c0_3, %c0_4] : memref<2x15x15xf32, #tpu.memory_space<vmem>>, vector<2x15x15xf32>
    tpu.vector_store %arg3[%c0_2, %c0_3, %c0_4], %0 {strides = array<i32>} : memref<2x15x15xf32, #tpu.memory_space<vmem>>, vector<2x15x15xf32>,
    return
  }
  func.func @transform_0(%arg0: i32, %arg1: i32) -> (i32, i32, i32) {
    %c0_i32 = arith.constant 0 : i32
    %c0_i32_0 = arith.constant 0 : i32
    return %arg0, %arg1, %c0_i32 : i32, i32, i32
  }
  func.func @transform_1(%arg0: i32, %arg1: i32) -> (i32, i32, i32) {
    %c0_i32 = arith.constant 0 : i32
    %c0_i32_0 = arith.constant 0 : i32
    return %arg0, %arg1, %c0_i32 : i32, i32, i32
  }
}

</mosaic_0001>

<bundles_post_ra>
// kernel: tpu_custom_call.1
= control target key start
LH: loop header
LB: loop body
LE: loop exit
PB: predicated region body
PF: predicated region fallthrough
CT: control target
= control target key end

     0   :  { %6 = vsyncpa [#allocation3], 0  ;;  %s571_s0 = inlined_call_operand.hbm [shape: f32[8,16,16], index: 0, kind: input, shape index: {}]   ;;  %s572_s1 = inlined_call_operand.vmem [shape: f32[8,15,15], index: 1, kind: output, shape index: {}]  }
   0x1   :  { %8 = vsyncpa [#allocation3 + $0x1], 0  ;;  %s448_s6 = smov 0   ;;  %s450_s7 = smov 0  }
   0x2   :  { %s452_s8 = smov 0   ;;  %s454_s9 = smov 0  }
   0x3   :  { %s456_s10 = smov 0   ;;  %s458_s11 = smov 0  }
   0x4 LB: > { %s278_s12 = sadd.s32 4294967295, %s433_s11   ;;  %s26_s13 = sadd.s32 1, %s429_s10  ;;  %s433_s11 = sphi %s458_s11, %s14_s11   ;;  %s429_s10 = sphi %s456_s10, %s580_s10   ;;  %s425_s9 = sphi %s454_s9, %s579_s9   ;;  %s421_s8 = sphi %s452_s8, %s578_s8   ;;  %s417_s7 = sphi %s450_s7, %s577_s7   ;;  %s413_s6 = sphi %s448_s6, %s576_s6  }
   0x5   : > { %p28_p0 = scmp.ge.s32.totalorder %s26_s13, 4  ;;  %s35_s14 = sadd.s32 1, %s421_s8 }
   0x6   : > { %p42_p1 = scmp.ne.s32.totalorder %s421_s8, %s417_s7  ;;  %p43_p2 = scmp.eq.s32.totalorder %s433_s11, 0 }
   0x7   : > { %s582_s13 = smov (%p28_p0, %s26_s13), 0  ;;  %p48_p4 = scmp.ne.s32.totalorder %s417_s7, %s413_s6 }
   0x8   : > { %p484_p3 = por %p43_p2, %p42_p1  ;;  %s30_s16 = ssub.s32 %s429_s10, %s582_s13 }
   0x9   : > { %p49_p5 = scmp.eq.s32.totalorder %s278_s12, 0  ;;  %p33_p6 = scmp.eq.s32.totalorder %s30_s16, 0 }
   0xa   : > { %p302_p8 = scmp.lt.s32.totalorder %s433_s11, 4  ;;  %s100_s19 = sand.u32 1, %s421_s8  }
   0xb   : > { %p491_p7 = por %p49_p5, %p48_p4  ;;  %s294_s20 = sshll.u32 %s429_s10, 9 }
   0xc   : > { %s497_s18 = scalar_select %p33_p6, %s421_s8, %s35_s14  }
   0xd   : > { %s282_s21 = sshll.u32 %s100_s19, 5  ;;  %s504_s24 = scalar_lea.hbm %s571_s0, %s294_s20 }
   0xe   : > { %s104_s25 = scalar_lea.vmem [#allocation2], %s282_s21  ;;  %p508_p9 = pnand %p302_p8, %p484_p3 }
   0xf   : > { %s114_s26 = sshll.u32 %s104_s25, 4  ;;  %s514_s28 = scalar_lea.sflag [#allocation3], %s100_s19  ;;  %s512_s26 = int_to_ptr.vmem [resolvable:$true] %s114_s26 }
  0x10   : > { %s353_s29 = scalar_lea.hbm %s504_s24, 512  ;;  %p355_p11 = pneg %p508_p9 }
  0x11   : > { %p354_p10 = scmp.ne.s32.totalorder %s504_s24, %s353_s29  ;;  %s358_s3 = scalar_lea.hbm %s571_s0, 2048 }
  0x12   : > { %p359_p0 = scmp.lt.u32.totalorder %s504_s24, %s571_s0  ;;  %p360_p1 = scmp.lt.u32.totalorder %s358_s3, %s353_s29 }
  0x13   : > { %p356_p12 = pnand %p355_p11, %p354_p10  ;;  %p362_p3 = scmp.lt.u32.totalorder %s353_s29, %s504_s24 }
  0x14   : > { %p361_p2 = por %p360_p1, %p359_p0 }
  0x15   : > { %p357_p13 = pneg %p356_p12 }
  0x16   : > { %p363_p4 = por %p362_p3, %p361_p2 }
  0x18   : > { %p364_p5 = pnand %p363_p4, %p357_p13 }
  0x1a   : > { %367 = shalt.err (!%p364_p5)
}
  0x1b   : > { %s368_s6 = scalar_lea.vmem %s512_s26, 512  ;;  %s435_s12 = smov [#allocation2]  }
  0x1c   : > { %p369_p6 = scmp.ne.s32.totalorder %s512_s26, %s368_s6  ;;  %s373_s14 = sshll.u32 %s435_s12, 4  ;;  %s374_s14 = int_to_ptr.vmem [resolvable:$false] %s373_s14 }
  0x1d   : > { %s375_s15 = scalar_lea.vmem %s374_s14, 1024  ;;  %p376_p12 = scmp.lt.s32.totalorder %s512_s26, %s374_s14 }
  0x1e   : > { %p371_p8 = pnand %p369_p6, %p355_p11  ;;  %p377_p0 = scmp.lt.s32.totalorder %s375_s15, %s368_s6 }
  0x20   : > { %p372_p10 = pneg %p371_p8  ;;  %p378_p1 = por %p377_p0, %p376_p12 }
  0x22   : > { %p379_p2 = pnand %p378_p1, %p372_p10 }
  0x24   : > { %382 = shalt.err (!%p379_p2)
}
  0x25   : > { %s436_s16 = smov 128   ;;  %s437_s19 = smov 8  }
  0x26   : > { %301 = dma.hbm_to_vmem [thread:$0]  (!%p508_p9), %s504_s24, 512, %s512_s26, %s514_s28, %s436_s16, %s436_s16, %s437_s19  }
  0x27   : > { %p286_p11 = scmp.ge.s32.totalorder %s433_s11, 1  ;;  %p122_p13 = scmp.lt.s32.totalorder %s433_s11, 5 }
  0x29   : > { %p123_p3 = pnand %p286_p11, %p122_p13 }
  0x2a   : > { %s128_s20 = sand.u32 (!%p123_p3), 1, %s417_s7  }
  0x2b   : > { %126 = sbr.rel (%p123_p3) target bundleno = 59 (0x3b), region = 24  ;;  %s287_s21 = sshll.u32 (!%p123_p3), %s128_s20, 5 }
  0x2c   : > { %s129_s22 = scalar_lea.sflag (!%p123_p3), [#allocation3], %s128_s20  ;;  %s132_s23 = scalar_lea.vmem (!%p123_p3), [#allocation2], %s287_s21 }
  0x32   : > { %408 = dma.done.wait (%p491_p7), %s129_s22, 512  }
  0x33   : > { %410 = vsyncadd (%p491_p7), %s129_s22, 4294966784  ;;  %s288_s25 = sshll.u32 %s425_s9, 1  ;;  %vm174_vm0 = vcmask 121856   ;;  %vm176_vm1 = vcmask 120832   ;;  %v170_v0 = vld [vmem:[%s132_s23] sm:$0xff]  ;;  %v172_v2 = vld [vmem:[%s132_s23 + $0x10] sm:$0xff] }
  0x34   : > { %p160_p4 = scmp.lt.s32.totalorder %s288_s25, 7  ;;  %v171_v1 = vld [vmem:[%s132_s23 + $0x8] sm:$0x7f]  ;;  %v173_v3 = vld [vmem:[%s132_s23 + $0x18] sm:$0x7f] }
  0x36   : > { %s584_s25 = smov (!%p160_p4, %s288_s25), 7 }
  0x37   : > { %s295_s24 = sshll.u32 %s584_s25, 4 }
  0x38   : > { %s167_s28 = scalar_lea.vmem %s572_s1, %s295_s24 }
  0x39   : > { %175 = vst.msk [vmem:[%s167_s28] sm:$0xff] %vm174_vm0, %v170_v0  ;;  %178 = vst.msk [vmem:[%s167_s28 + $0x10] sm:$0xff] %vm174_vm0, %v172_v2 }
  0x3a   : > { %177 = vst.msk [vmem:[%s167_s28 + $0x8] sm:$0x7f] %vm176_vm1, %v171_v1  ;;  %179 = vst.msk [vmem:[%s167_s28 + $0x18] sm:$0x7f] %vm176_vm1, %v173_v3 }
  0x3b PF: > { %s14_s11 = sadd.s32 1, %s433_s11   ;;  %s576_s6 = smov %s417_s7 }
  0x3c   : > { %p11_p7 = scmp.ge.s32.totalorder %s14_s11, 6   ;;  %s577_s7 = smov %s421_s8 }
  0x3d   : > { %s578_s8 = smov %s497_s18  ;;  %s579_s9 = smov %s429_s10 }
  0x3e   : > { %s580_s10 = smov %s582_s13  ;;  %13 = sbr.rel (!%p11_p7) target bundleno = 4 (0x4), region = 64 }
  0x45   :  { %213 = vsyncpa [#allocation3], 1 }
  0x46   :  { %215 = vsyncpa [#allocation3 + $0x1], 1 }

</bundles_post_ra>
